<compile_context>
chip_gen: v6e
topology: v6e:2x2x1
jax: 0.10.0
libtpu: 0.0.40
codegen_flags: <defaults>
</compile_context>

<pallas_src>
import functools

import jax
import jax.numpy as jnp
from jax.experimental import pallas as pl
from jax.experimental.pallas import tpu as pltpu

_SUB = 8  # TPU sublane width (second-to-last dim)


def _round_up(x, m):
  return (x + m - 1) // m * m


def _cdiv(a, b):
  return (a + b - 1) // b


def _mlp_kernel(x_ref, w0_ref, b0_ref, w1_ref, b1_ref, w2_ref, b2_ref, o_ref):
  """Fused 3-layer MLP: (relu(relu(x@W0+b0)@W1+b1))@W2+b2 on one batch tile."""
  h = jnp.dot(x_ref[...], w0_ref[...], preferred_element_type=jnp.float32)
  h = h + b0_ref[...]
  h = jnp.maximum(h, 0.0)                       # ReLU (not final layer)

  h = jnp.dot(h.astype(w1_ref.dtype), w1_ref[...],
              preferred_element_type=jnp.float32)
  h = h + b1_ref[...]
  h = jnp.maximum(h, 0.0)

  h = jnp.dot(h.astype(w2_ref.dtype), w2_ref[...],
              preferred_element_type=jnp.float32)
  h = h + b2_ref[...]                           # activate_final=False -> no ReLU
  o_ref[...] = h.astype(o_ref.dtype)


def _const_spec(shape):
  """Full-array block whose index_map is constant (loaded once, stays resident)."""
  return pl.BlockSpec(shape, lambda i: (0,) * len(shape))


def prepare_mlp_reds_params(params, compute_dtype=None):
  """One-time parameter prep, hoisted out of the per-call path.

  Optionally casts weights to `compute_dtype` (bf16 recommended on v6e/v7x);
  biases are kept in f32 so the bias add happens on the f32 accumulator.
  """
  prepped = []
  for w, b in params:
    if compute_dtype is not None:
      w = w.astype(compute_dtype)
    b = jnp.reshape(b, (1, -1)).astype(jnp.float32)
    prepped.append((w, b))
  return tuple(prepped)


def mlp_reds_forward(x, params, *, max_tile_b=1024, even_steps=True):
  """Fused MLP forward.

  No lane padding anywhere: x / output blocks use their real feature widths.
  Batch is padded only to a multiple of 8; small batches run as one grid step
  (zero wrapper ops), large batches split into an even number of near-equal
  sublane-aligned tiles on a "parallel" grid axis (v7x megacore sharding).
  """
  (w0, b0), (w1, b1), (w2, b2) = params
  B, d_in = x.shape
  d_out = w2.shape[1]

  # ---- Batch tiling: minimal padding, even step count for large batches -----
  B8 = _round_up(B, _SUB)
  if B8 <= max_tile_b:
    n_steps = 1
    tile_b = B8
  else:
    n_steps = _cdiv(B8, max_tile_b)
    if even_steps and n_steps % 2:
      n_steps += 1                       # both v7x TensorCores get work
    tile_b = _round_up(_cdiv(B8, n_steps), _SUB)
  B_p = tile_b * n_steps

  x_p = x if B_p == B else jnp.pad(x, ((0, B_p - B), (0, 0)))

  grid_spec = pltpu.PrefetchScalarGridSpec(
      num_scalar_prefetch=0,
      grid=(n_steps,),
      in_specs=[
          # Full (real-width) last dim for x; only the batch axis is tiled.
          # TODO(synk): try pipeline_mode=pl.Buffered(3) here only if a trace
          # shows exposed input DMA on the multi-tile path.
          pl.BlockSpec((tile_b, d_in), lambda i: (i, 0)),
          _const_spec(w0.shape), _const_spec(b0.shape),
          _const_spec(w1.shape), _const_spec(b1.shape),
          _const_spec(w2.shape), _const_spec(b2.shape),
      ],
      # Real-width output: no d_out padding, no lane slice afterwards.
      out_specs=pl.BlockSpec((tile_b, d_out), lambda i: (i, 0)),
  )

  out_p = pl.pallas_call(
      _mlp_kernel,
      out_shape=jax.ShapeDtypeStruct((B_p, d_out), x.dtype),
      grid_spec=grid_spec,
      compiler_params=pltpu.CompilerParams(
          dimension_semantics=("parallel",)),  # batch tiles shard across TCs (v7x)
  )(x_p, w0, b0, w1, b1, w2, b2)

  return out_p if B_p == B else out_p[:B]


def init_mlp_reds_params(key, input_dim, hidden_dims, dtype=jnp.float32):
  """Deterministic xavier_uniform weights / zero biases, matching __init__."""
  dims = [input_dim] + list(hidden_dims)
  params = []
  for i in range(len(hidden_dims)):
    in_dim, out_dim = dims[i], dims[i + 1]
    key, sub = jax.random.split(key)
    limit = (6.0 / (in_dim + out_dim)) ** 0.5   # xavier_uniform_
    w = jax.random.uniform(sub, (in_dim, out_dim), dtype=dtype,
                           minval=-limit, maxval=limit)
    b = jnp.zeros((1, out_dim), dtype=dtype)    # nn.init.zeros_
    params.append((w, b))
  return params


def mlp_reds_reference(x, params):
  """Pure-JAX reference mirroring the PyTorch nn.Sequential semantics."""
  n = len(params)
  h = x
  for i, (w, b) in enumerate(params):
    h = h @ w + b
    if i + 1 < n:                               # activate_final=False
      h = jnp.maximum(h, 0.0)
  return h


if __name__ == "__main__":
  # MLP_REDS(hidden_dims=(64, 32, 16), input_dim=32)
  input_dim = 32
  hidden_dims = (64, 32, 16)

  key = jax.random.PRNGKey(0)
  k_x, k_p, k_x2, k_x3 = jax.random.split(key, 4)
  raw_params = init_mlp_reds_params(k_p, input_dim, hidden_dims)
  params = prepare_mlp_reds_params(raw_params)          # one-time prep (f32)

  fwd = jax.jit(functools.partial(mlp_reds_forward))
  fwd_small_tiles = jax.jit(
      functools.partial(mlp_reds_forward, max_tile_b=256))

  # Case 1: small batch (multiple of 8) -> single grid step, zero-op wrapper.
  x = jax.random.normal(k_x, (16, input_dim), dtype=jnp.float32)
  out = jax.block_until_ready(fwd(x, params))
  ref = mlp_reds_reference(x, raw_params)
  assert out.shape == (16, hidden_dims[-1])
  assert jnp.allclose(out, ref, atol=1e-5, rtol=1e-5), "mismatch (B=16)"

  # Case 2: larger batch forced onto the multi-tile path (even step count,
  # minimal batch padding: 528 -> 4 tiles of 136 rows).
  x2 = jax.random.normal(k_x2, (528, input_dim), dtype=jnp.float32)
  out2 = jax.block_until_ready(fwd_small_tiles(x2, params))
  ref2 = mlp_reds_reference(x2, raw_params)
  assert out2.shape == (528, hidden_dims[-1])
  assert jnp.allclose(out2, ref2, atol=1e-5, rtol=1e-5), "mismatch (B=528)"

  # Case 3: ragged batch (not a multiple of 8) -> pad to 16 rows, slice back.
  x3 = jax.random.normal(k_x3, (13, input_dim), dtype=jnp.float32)
  out3 = jax.block_until_ready(fwd(x3, params))
  ref3 = mlp_reds_reference(x3, raw_params)
  assert out3.shape == (13, hidden_dims[-1])
  assert jnp.allclose(out3, ref3, atol=1e-5, rtol=1e-5), "mismatch (B=13)"

  print("KERNEL_OK")
</pallas_src>

<mosaic_0001>
module attributes {stable_mosaic.version = 11 : i64} {
  func.func @_mlp_kernel(%arg0: i32, %arg1: memref<16x32xf32, #tpu.memory_space<vmem>>, %arg2: memref<32x64xf32, #tpu.memory_space<vmem>>, %arg3: memref<1x64xf32, #tpu.memory_space<vmem>>, %arg4: memref<64x32xf32, #tpu.memory_space<vmem>>, %arg5: memref<1x32xf32, #tpu.memory_space<vmem>>, %arg6: memref<32x16xf32, #tpu.memory_space<vmem>>, %arg7: memref<1x16xf32, #tpu.memory_space<vmem>>, %arg8: memref<16x16xf32, #tpu.memory_space<vmem>>) attributes {dimension_semantics = [#tpu.dimension_semantics<parallel>], iteration_bounds = array<i64: 1>, scalar_prefetch = 0 : i64, scratch_operands = 0 : i64, tpu.core_type = #tpu.core_type<tc>, window_params = [{transform_indices = @transform_0, window_bounds = array<i64: 16, 32>}, {pipeline_mode = #tpu.pipeline_mode<synchronous>, transform_indices = @transform_1, window_bounds = array<i64: 32, 64>}, {pipeline_mode = #tpu.pipeline_mode<synchronous>, transform_indices = @transform_2, window_bounds = array<i64: 1, 64>}, {pipeline_mode = #tpu.pipeline_mode<synchronous>, transform_indices = @transform_3, window_bounds = array<i64: 64, 32>}, {pipeline_mode = #tpu.pipeline_mode<synchronous>, transform_indices = @transform_4, window_bounds = array<i64: 1, 32>}, {pipeline_mode = #tpu.pipeline_mode<synchronous>, transform_indices = @transform_5, window_bounds = array<i64: 32, 16>}, {pipeline_mode = #tpu.pipeline_mode<synchronous>, transform_indices = @transform_6, window_bounds = array<i64: 1, 16>}, {transform_indices = @transform_7, window_bounds = array<i64: 16, 16>}]} {
    %c0 = arith.constant 0 : index
    %c0_0 = arith.constant 0 : index
    %0 = vector.load %arg1[%c0, %c0_0] : memref<16x32xf32, #tpu.memory_space<vmem>>, vector<16x32xf32>
    %c0_1 = arith.constant 0 : index
    %c0_2 = arith.constant 0 : index
    %1 = vector.load %arg2[%c0_1, %c0_2] : memref<32x64xf32, #tpu.memory_space<vmem>>, vector<32x64xf32>
    %cst = arith.constant dense<0.000000e+00> : vector<16x64xf32>
    %2 = tpu.matmul %0, %1, %cst {dimension_numbers = #tpu.dot_dimension_numbers<[1], [0], [0], [1], [0, 0, 1, 1], [], []>} : vector<16x32xf32>, vector<32x64xf32>, vector<16x64xf32> -> vector<16x64xf32>
    %c0_3 = arith.constant 0 : index
    %c0_4 = arith.constant 0 : index
    %3 = vector.load %arg3[%c0_3, %c0_4] : memref<1x64xf32, #tpu.memory_space<vmem>>, vector<1x64xf32>
    %4 = vector.broadcast %3 : vector<1x64xf32> to vector<16x64xf32>
    %5 = arith.addf %2, %4 : vector<16x64xf32>
    %cst_5 = arith.constant 0.000000e+00 : f32
    %6 = vector.broadcast %cst_5 : f32 to vector<16x64xf32>
    %7 = arith.maximumf %5, %6 : vector<16x64xf32>
    %c0_6 = arith.constant 0 : index
    %c0_7 = arith.constant 0 : index
    %8 = vector.load %arg4[%c0_6, %c0_7] : memref<64x32xf32, #tpu.memory_space<vmem>>, vector<64x32xf32>
    %cst_8 = arith.constant dense<0.000000e+00> : vector<16x32xf32>
    %9 = tpu.matmul %7, %8, %cst_8 {dimension_numbers = #tpu.dot_dimension_numbers<[1], [0], [0], [1], [0, 0, 1, 1], [], []>} : vector<16x64xf32>, vector<64x32xf32>, vector<16x32xf32> -> vector<16x32xf32>
    %c0_9 = arith.constant 0 : index
    %c0_10 = arith.constant 0 : index
    %10 = vector.load %arg5[%c0_9, %c0_10] : memref<1x32xf32, #tpu.memory_space<vmem>>, vector<1x32xf32>
    %11 = vector.broadcast %10 : vector<1x32xf32> to vector<16x32xf32>
    %12 = arith.addf %9, %11 : vector<16x32xf32>
    %cst_11 = arith.constant 0.000000e+00 : f32
    %13 = vector.broadcast %cst_11 : f32 to vector<16x32xf32>
    %14 = arith.maximumf %12, %13 : vector<16x32xf32>
    %c0_12 = arith.constant 0 : index
    %c0_13 = arith.constant 0 : index
    %15 = vector.load %arg6[%c0_12, %c0_13] : memref<32x16xf32, #tpu.memory_space<vmem>>, vector<32x16xf32>
    %cst_14 = arith.constant dense<0.000000e+00> : vector<16x16xf32>
    %16 = tpu.matmul %14, %15, %cst_14 {dimension_numbers = #tpu.dot_dimension_numbers<[1], [0], [0], [1], [0, 0, 1, 1], [], []>} : vector<16x32xf32>, vector<32x16xf32>, vector<16x16xf32> -> vector<16x16xf32>
    %c0_15 = arith.constant 0 : index
    %c0_16 = arith.constant 0 : index
    %17 = vector.load %arg7[%c0_15, %c0_16] : memref<1x16xf32, #tpu.memory_space<vmem>>, vector<1x16xf32>
    %18 = vector.broadcast %17 : vector<1x16xf32> to vector<16x16xf32>
    %19 = arith.addf %16, %18 : vector<16x16xf32>
    %c0_17 = arith.constant 0 : index
    %c0_18 = arith.constant 0 : index
    %20 = vector.load %arg8[%c0_17, %c0_18] : memref<16x16xf32, #tpu.memory_space<vmem>>, vector<16x16xf32>
    tpu.vector_store %arg8[%c0_17, %c0_18], %19 {strides = array<i32>} : memref<16x16xf32, #tpu.memory_space<vmem>>, vector<16x16xf32>,
    return
  }
  func.func @transform_0(%arg0: i32) -> (i32, i32) {
    %c0_i32 = arith.constant 0 : i32
    %c0_i32_0 = arith.constant 0 : i32
    return %arg0, %c0_i32 : i32, i32
  }
  func.func @transform_1(%arg0: i32) -> (i32, i32) {
    %c0_i32 = arith.constant 0 : i32
    %c0_i32_0 = arith.constant 0 : i32
    %c0_i32_1 = arith.constant 0 : i32
    return %c0_i32, %c0_i32_0 : i32, i32
  }
  func.func @transform_2(%arg0: i32) -> (i32, i32) {
    %c0_i32 = arith.constant 0 : i32
    %c0_i32_0 = arith.constant 0 : i32
    %c0_i32_1 = arith.constant 0 : i32
    return %c0_i32, %c0_i32_0 : i32, i32
  }
  func.func @transform_3(%arg0: i32) -> (i32, i32) {
    %c0_i32 = arith.constant 0 : i32
    %c0_i32_0 = arith.constant 0 : i32
    %c0_i32_1 = arith.constant 0 : i32
    return %c0_i32, %c0_i32_0 : i32, i32
  }
  func.func @transform_4(%arg0: i32) -> (i32, i32) {
    %c0_i32 = arith.constant 0 : i32
    %c0_i32_0 = arith.constant 0 : i32
    %c0_i32_1 = arith.constant 0 : i32
    return %c0_i32, %c0_i32_0 : i32, i32
  }
  func.func @transform_5(%arg0: i32) -> (i32, i32) {
    %c0_i32 = arith.constant 0 : i32
    %c0_i32_0 = arith.constant 0 : i32
    %c0_i32_1 = arith.constant 0 : i32
    return %c0_i32, %c0_i32_0 : i32, i32
  }
  func.func @transform_6(%arg0: i32) -> (i32, i32) {
    %c0_i32 = arith.constant 0 : i32
    %c0_i32_0 = arith.constant 0 : i32
    %c0_i32_1 = arith.constant 0 : i32
    return %c0_i32, %c0_i32_0 : i32, i32
  }
  func.func @transform_7(%arg0: i32) -> (i32, i32) {
    %c0_i32 = arith.constant 0 : i32
    %c0_i32_0 = arith.constant 0 : i32
    return %arg0, %c0_i32 : i32, i32
  }
}

</mosaic_0001>

<bundles_post_ra>
// kernel: mlp_reds_forward.1
= control target key start
LH: loop header
LB: loop body
LE: loop exit
PB: predicated region body
PF: predicated region fallthrough
CT: control target
= control target key end

     0   :  { %vm40_vm0 = vcmask 261120   ;;  %s544_s0 = inlined_call_operand.vmem [shape: f32[16,32], index: 0, kind: input, shape index: {}]   ;;  %s545_s1 = inlined_call_operand.vmem [shape: f32[32,64], index: 1, kind: input, shape index: {}]   ;;  %s546_s2 = inlined_call_operand.vmem [shape: f32[1,64], index: 2, kind: input, shape index: {}]   ;;  %s547_s3 = inlined_call_operand.vmem [shape: f32[64,32], index: 3, kind: input, shape index: {}]   ;;  %s548_s4 = inlined_call_operand.vmem [shape: f32[1,32], index: 4, kind: input, shape index: {}]   ;;  %s549_s5 = inlined_call_operand.vmem [shape: f32[32,16], index: 5, kind: input, shape index: {}]   ;;  %s550_s6 = inlined_call_operand.vmem [shape: f32[1,16], index: 6, kind: input, shape index: {}]   ;;  %s551_s7 = inlined_call_operand.hbm [shape: f32[16,16], index: 7, kind: output, shape index: {}]  }
   0x1   :  { %v32_v0 = vld [vmem:[%s545_s1 + $0x18] sm:$0xff]  ;;  %v31_v1 = vld [vmem:[%s545_s1 + $0x10] sm:$0xff]  ;;  %v27_v2 = vld [vmem:[%s544_s0] sm:$0xff] }
   0x2   :  { %365 = vmatprep.subr.mxu0 %v32_v0  ;;  %v30_v3 = vld [vmem:[%s545_s1 + $0x8] sm:$0xff]  ;;  %373 = vmatprep.mubr.msk.f32.mxu0 %vm40_vm0, %v27_v2  ;;  %v131_v4 = vld [vmem:[%s547_s3 + $0x38] sm:$0xff]  ;;  %v130_v5 = vld [vmem:[%s547_s3 + $0x30] sm:$0xff] }
   0x3   :  { %366 = vmatpush3.msra.mxu0 %v32_v0  ;;  %376 = vmatprep.subr.mxu1 %v131_v4 }
   0x4   :  { %367 = vmatprep.subr.mxu0 %v31_v1 }
   0x5   :  { %12 = vsyncpa [#allocation3], 0  ;;  %368 = vmatpush3.msra.mxu0 %v31_v1  ;;  %v29_v6 = vld [vmem:[%s545_s1] sm:$0xff]  ;;  %377 = vmatpush3.msra.mxu1 %v131_v4  ;;  %v129_v7 = vld [vmem:[%s547_s3 + $0x28] sm:$0xff]  ;;  %vm139_vm1 = vcmask 523264   ;;  %vm315_vm2 = vcmask 130048  }
   0x6   :  { %369 = vmatprep.subr.mxu0 %v30_v3  ;;  %378 = vmatprep.subr.mxu1 %v130_v5  ;;  %v28_v8 = vld [vmem:[%s544_s0 + $0x8] sm:$0xff]  ;;  %v128_v9 = vld [vmem:[%s547_s3 + $0x20] sm:$0xff]  ;;  %v127_v10 = vld [vmem:[%s547_s3 + $0x18] sm:$0xff] }
   0x7   :  { %370 = vmatpush3.msra.mxu0 %v30_v3  ;;  %379 = vmatpush3.msra.mxu1 %v130_v5  ;;  %v126_v11 = vld [vmem:[%s547_s3 + $0x10] sm:$0xff]  ;;  %v125_v12 = vld [vmem:[%s547_s3 + $0x8] sm:$0xff]  ;;  %v124_v13 = vld [vmem:[%s547_s3] sm:$0xff] }
   0x8   :  { %371 = vmatprep.subr.mxu0 %v29_v6  ;;  %380 = vmatprep.subr.mxu1 %v129_v7  ;;  %v334_v14 = vld [vmem:[%s546_s2] ss:$0 sm:$0xff]  ;;  %v226_v21 = vld [vmem:[%s549_s5 + $0x18] sm:$0xff]  ;;  %v225_v22 = vld [vmem:[%s549_s5 + $0x10] sm:$0xff] }
   0x9   :  { %372 = vmatpush3.msra.mxu0 %v29_v6  ;;  %381 = vmatpush3.msra.mxu1 %v129_v7  ;;  %v224_v23 = vld [vmem:[%s549_s5 + $0x8] sm:$0xff]  ;;  %v223_v24 = vld [vmem:[%s549_s5] sm:$0xff]  ;;  %s431_s5 = smov [#allocation2]  }
   0xa   :  { %374 = vmatmul.mubr.msk.f32.vlgmr.msra.gmra.mxu0 %vm40_vm0, %v28_v8  ;;  %382 = vmatprep.subr.mxu1 %v128_v9  ;;  %v337_v25 = vld [vmem:[%s548_s4] ss:$0 sm:$0xff]  ;;  %s323_s16 = sshll.u32 %s431_s5, 4  ;;  %s324_s16 = int_to_ptr.vmem [resolvable:$true] %s323_s16 }
   0xb   :  { %383 = vmatpush3.msra.mxu1 %v128_v9  ;;  %395 = vmatprep.subr.mxu0 %v226_v21  ;;  %v340_v32 = vld [vmem:[%s550_s6] ss:$0 sm:$0xff]  ;;  %s409_s4 = scalar_lea.vmem %s324_s16, 256  ;;  %p414_p1 = scmp.lt.s32.totalorder %s324_s16, %s324_s16 }
   0xc   :  { %384 = vmatprep.subr.mxu1 %v127_v10  ;;  %396 = vmatpush3.msra.mxu0 %v226_v21  ;;  %p410_p0 = scmp.ne.s32.totalorder %s324_s16, %s409_s4  ;;  %p415_p2 = scmp.lt.s32.totalorder %s409_s4, %s409_s4 }
   0xd   :  { %385 = vmatpush3.msra.mxu1 %v127_v10  ;;  %397 = vmatprep.subr.mxu0 %v225_v22 }
   0xe   :  { %386 = vmatprep.subr.mxu1 %v126_v11  ;;  %398 = vmatpush3.msra.mxu0 %v225_v22  ;;  %p416_p3 = por %p415_p2, %p414_p1 }
   0xf   :  { %387 = vmatpush3.msra.mxu1 %v126_v11  ;;  %399 = vmatprep.subr.mxu0 %v224_v23 }
  0x10   :  { %388 = vmatprep.subr.mxu1 %v125_v12  ;;  %400 = vmatpush3.msra.mxu0 %v224_v23  ;;  %p417_p4 = pnand %p416_p3, %p410_p0 }
  0x11   :  { %389 = vmatpush3.msra.mxu1 %v125_v12  ;;  %401 = vmatprep.subr.mxu0 %v223_v24 }
  0x12   :  { %390 = vmatprep.subr.mxu1 %v124_v13  ;;  %402 = vmatpush3.msra.mxu0 %v223_v24 }
  0x13   :  { %391 = vmatpush3.msra.mxu1 %v124_v13 }
  0xca   :  { %v375_v15 = vpop.f32.mrf.mxu0 }
  0xcb   :  { %v119_v16 = vadd.f32 %v375_v15, %v334_v14 }
  0xcc   :  { %v113_v17 = vpop.f32.mrf.mxu0 }
  0xcd   :  { %v114_v18 = vadd.f32 %v334_v14, %v113_v17  ;;  %v123_v20 = vmax.f32 %v119_v16, 0.0 }
  0xcf   :  { %v122_v19 = vmax.f32 %v114_v18, 0.0 }
  0xd1   :  { %392 = vmatprep.mubr.msk.f32.mxu1 %vm139_vm1, %v122_v19 }
  0xd2   :  { %393 = vmatmul.mubr.msk.f32.vlgmr.msra.gmra.mxu1 %vm139_vm1, %v123_v20 }
 0x192   :  { %v394_v26 = vpop.f32.mrf.mxu1 }
 0x193   :  { %v218_v27 = vadd.f32 %v394_v26, %v337_v25 }
 0x194   :  { %v212_v28 = vpop.f32.mrf.mxu1 }
 0x195   :  { %v213_v29 = vadd.f32 %v337_v25, %v212_v28  ;;  %v222_v31 = vmax.f32 %v218_v27, 0.0 }
 0x197   :  { %v221_v30 = vmax.f32 %v213_v29, 0.0 }
 0x199   :  { %403 = vmatprep.mubr.msk.f32.mxu0 %vm40_vm0, %v221_v30 }
 0x19a   :  { %404 = vmatmul.mubr.msk.f32.vlgmr.msra.gmra.mxu0 %vm40_vm0, %v222_v31 }
 0x25a   :  { %v405_v33 = vpop.f32.mrf.mxu0 }
 0x25b   :  { %v312_v34 = vadd.f32 %v405_v33, %v340_v32 }
 0x25c   :  { %v306_v35 = vpop.f32.mrf.mxu0 }
 0x25d   :  { %317 = vst.msk [vmem:[#allocation2 + $0x8] sm:$0xff] %vm315_vm2, %v312_v34  ;;  %v307_v36 = vadd.f32 %v340_v32, %v306_v35 }
 0x25f   :  { %316 = vst.msk [vmem:[#allocation2] sm:$0xff] %vm315_vm2, %v307_v36 }
 0x260   :  { %420 = shalt.err (!%p417_p4)
}
 0x261   :  { %s432_s17 = smov 128   ;;  %s433_s18 = smov 8  }
 0x262   :  { %329 = dma.vmem_to_hbm [thread:$0]  %s324_s16, 256, %s551_s7, [#allocation3], %s432_s17, %s432_s17, %s433_s18  }
 0x263   :  { %429 = dma.done.wait [#allocation3], 256  }
 0x264   :  { %430 = vsyncadd [#allocation3], 4294967040 }
 0x265   :  { %333 = vsyncpa [#allocation3], 1 }

</bundles_post_ra>
